<compile_context>
chip_gen: v7x
topology: tpu7x:2x2x1
jax: 0.10.0
libtpu: 0.0.40
codegen_flags: <defaults>
</compile_context>

<pallas_src>
from functools import partial

import jax
import jax.numpy as jnp
import numpy as np
from jax.experimental import pallas as pl
from jax.experimental.pallas import tpu as pltpu


# ------------------------------- helpers -------------------------------------

def _round_up(x, m):
    return ((x + m - 1) // m) * m


def _vmem_capacity_bytes():
    """Per-core VMEM capacity; falls back to the v7x value (the smallest)."""
    try:
        cap = getattr(pltpu.get_tpu_info(), "vmem_capacity_bytes", None)
        if cap:
            return int(cap)
    except Exception:
        pass
    return 64 << 20


def _padded2d_bytes(r, c, itemsize=4, sub=8):
    """VMEM bytes of an (r, c) block after (sublane, 128-lane) padding."""
    return _round_up(max(r, 1), sub) * _round_up(max(c, 1), 128) * itemsize


def _choose_batch_tile(B, s_chunks, lane_w, hist_itemsize, D, vmem_cap):
    """Pick TB from padding-aware VMEM bytes and a generation-aware budget.

    Accounts for sublane/lane padding of every streamed block plus the f32
    pooling accumulation temp, and caps TB so the grid has >=4 steps when the
    batch allows it (v7x megacore needs >=2 steps; pipelining wants more).
    """
    sub = 16 if hist_itemsize == 2 else 8
    hist_row = _round_up(s_chunks, sub) * _round_up(lane_w, 128) * hist_itemsize
    temp_row = _round_up(s_chunks, 8) * _round_up(lane_w, 128) * 4  # f32 pool temp
    item_row = 2 * _round_up(D, 128) * 4
    out_row = 128 * 4
    stream_row = hist_row + item_row + out_row            # double-buffered streams
    budget = int(0.45 * vmem_cap)
    tb = budget // (2 * stream_row + temp_row)
    tb = min(int(tb), 1024)
    tb -= tb % 8                                          # sublane-aligned tiles
    tb = max(tb, 8)
    tb = min(tb, max(8, _round_up(pl.cdiv(B, 4), 8)))     # >=4 grid steps if possible
    return tb, stream_row, temp_row


# ----------------------------- Pallas kernel ---------------------------------

def din_kernel(hist_ref, items_ref,
               w_user_ref, b_user_ref,
               w1_u_ref, w1_i_ref, b1_ref,
               w2_ref, b2_ref, wo_ref,
               out_ref, *, k):
    f32 = jnp.float32
    d = w_user_ref.shape[0]

    # Masked mean-pool over history.  The (mask / S) factor was folded into the
    # streamed embeddings in the wrapper; history arrives lane-packed as
    # (TB, S/k, k*D) so the last dim is 128-lane dense.  Accumulate in f32.
    pooled_kd = jnp.sum(hist_ref[...], axis=1, dtype=f32)          # (TB, k*D)
    pooled = pooled_kd[:, :d]
    for j in range(1, k):                                          # fold k lane-groups
        pooled = pooled + pooled_kd[:, j * d:(j + 1) * d]          # (TB, D)

    # user_layer with BatchNorm (running stats) pre-folded into W'/b'.
    u = jnp.dot(pooled, w_user_ref[...],
                preferred_element_type=f32) + b_user_ref[...]      # (TB, D)

    # Deep MLP.  concat([u, item], -1) @ W1 == u @ W1_u + item @ W1_i; the
    # u-dependent half is shared by the pos and neg branches -> compute once.
    base = jnp.dot(u, w1_u_ref[...],
                   preferred_element_type=f32) + b1_ref[...]       # (TB, d1)

    def branch(item_emb):                                          # (TB, D) -> (TB, d2)
        y = jnp.maximum(
            base + jnp.dot(item_emb, w1_i_ref[...], preferred_element_type=f32), 0.0)
        # TODO(synk): dropout layers are identity in eval mode (no in-kernel RNG).
        y = jnp.dot(y, w2_ref[...], preferred_element_type=f32) + b2_ref[...]
        return jnp.maximum(y, 0.0)

    # pos/neg item embeddings arrive pre-stacked as one (2, TB, D) block; no
    # in-kernel concatenates / duplicated "base" copies.
    diff = branch(items_ref[0]) - branch(items_ref[1])             # (TB, d2)

    # Output layer: width-1 matmul replaced by a VPU reduce on the pos-neg
    # difference (the output-layer bias cancels in the subtraction).
    out_ref[...] = jnp.sum(diff * wo_ref[...], axis=-1, keepdims=True)


# ------------------------------- parameters ----------------------------------

def make_params(key, user_num, item_num, category_num, embedding_dims, deep_dims):
    D = embedding_dims
    ks = jax.random.split(key, 12)
    scale = 0.1

    def rnd(k, shape):
        return (scale * jax.random.normal(k, shape)).astype(jnp.float32)

    item_tab = rnd(ks[0], (item_num, D // 2)).at[0].set(0.0)   # padding_idx = 0
    # NOTE: sized (item_num, D/2) to match the torch module exactly
    # (nn.Embedding(item_num, embedding_dims // 2) for category_embedding).
    cat_tab = rnd(ks[1], (item_num, D // 2)).at[0].set(0.0)    # padding_idx = 0
    category_list = (jnp.arange(item_num, dtype=jnp.int32) % category_num)

    return dict(
        item_tab=item_tab,
        cat_tab=cat_tab,
        category_list=category_list,
        w_user=rnd(ks[2], (D, D)),
        b_user=rnd(ks[3], (1, D)),
        bn_gamma=jnp.ones((1, D), jnp.float32),
        bn_beta=jnp.zeros((1, D), jnp.float32),
        bn_mean=jnp.zeros((1, D), jnp.float32),
        bn_var=jnp.ones((1, D), jnp.float32),
        w1=rnd(ks[4], (2 * D, deep_dims[0])),
        b1=rnd(ks[5], (1, deep_dims[0])),
        w2=rnd(ks[6], (deep_dims[0], deep_dims[1])),
        b2=rnd(ks[7], (1, deep_dims[1])),
        wo=rnd(ks[8], (deep_dims[1], 1)),
        bo=rnd(ks[9], (1, 1)),
    )


def embed_items(params, ids):
    """ids: int32 array of any shape -> (..., D) concatenated item+category emb."""
    cat_ids = params["category_list"][ids]
    return jnp.concatenate(
        [params["item_tab"][ids], params["cat_tab"][cat_ids]], axis=-1)


def _fold_inference_weights(params):
    """Fold BatchNorm (running stats) into the user layer and pre-split W1."""
    eps = 1e-5
    scale = params["bn_gamma"] * jax.lax.rsqrt(params["bn_var"] + eps)   # (1, D)
    shift = params["bn_beta"] - params["bn_mean"] * scale                # (1, D)
    w_user = scale.reshape(-1, 1) * params["w_user"]                     # (D, D)
    b_user = shift @ params["w_user"] + params["b_user"]                 # (1, D)
    D = params["w_user"].shape[0]
    w1 = params["w1"]
    return dict(
        w_user=w_user, b_user=b_user,
        w1_u=w1[:D, :], w1_i=w1[D:, :], b1=params["b1"],
        w2=params["w2"], b2=params["b2"],
        wo_t=params["wo"].T,   # (1, d2); output bias cancels in the pos-neg diff
    )


# ------------------------------- forward -------------------------------------

def din_forward(params, user, item, neg_item, history_item,
                hist_dtype=jnp.bfloat16):
    """user: (B,) int (unused in the torch forward); item/neg_item: (B,);
    history_item: (B, S).  Returns (B,) pos-neg score difference.

    hist_dtype=bfloat16 (default) halves HBM traffic / VMEM footprint of the
    dominant history stream (pooling still accumulates in f32); pass
    hist_dtype=jnp.float32 for bit-faithful f32 semantics.
    """
    del user  # user_embedding is never used in the torch forward pass
    B, S = history_item.shape
    D = params["w_user"].shape[0]
    d1 = params["w1"].shape[1]
    d2 = params["w2"].shape[1]

    # --- embeddings.  The mask and the 1/S divisor are folded into the gather
    # fusion so the kernel streams ready-to-sum values and needs no mask input.
    # TODO(synk): the suggested in-kernel id->embedding gather (scalar-prefetch
    # ids + jnp.take on VMEM-resident tables) is not implemented: Mosaic has no
    # general vector row-gather lowering, so the gather stays an XLA fusion.
    maskS = (history_item != 0).astype(jnp.float32) / float(S)        # (B, S)
    hist = embed_items(params, history_item) * maskS[:, :, None]      # (B, S, D) f32
    hist = hist.astype(hist_dtype)
    item_emb = embed_items(params, item).astype(jnp.float32)          # (B, D)
    neg_emb = embed_items(params, neg_item).astype(jnp.float32)       # (B, D)
    items = jnp.stack([item_emb, neg_emb], axis=0)                    # (2, B, D)

    # --- lane-pack the history: (B, S, D) -> (B, S/k, k*D), 128-lane-dense.
    k = 128 // D if (D < 128 and 128 % D == 0) else 1
    S_pad = _round_up(S, k)
    if S_pad != S:    # zero rows contribute nothing to the (already-masked) sum
        hist = jnp.pad(hist, ((0, 0), (0, S_pad - S), (0, 0)))
    s_chunks = S_pad // k
    hist = hist.reshape(B, s_chunks, k * D)

    # --- batch tiling: TB multiple of 8; B padded so the grid covers exactly.
    itemsize = jnp.dtype(hist_dtype).itemsize
    vmem_cap = _vmem_capacity_bytes()
    TB, stream_row, temp_row = _choose_batch_tile(
        B, s_chunks, k * D, itemsize, D, vmem_cap)
    B_pad = _round_up(B, TB)
    if B_pad != B:    # zero padding keeps padded rows finite; clipped on return
        hist = jnp.pad(hist, ((0, B_pad - B), (0, 0), (0, 0)))
        items = jnp.pad(items, ((0, 0), (0, B_pad - B), (0, 0)))
    grid = (B_pad // TB,)

    fw = _fold_inference_weights(params)

    # --- VMEM limit / cost estimate (generation- and padding-aware).
    weight_bytes = 2 * (_padded2d_bytes(D, D) + _padded2d_bytes(1, D)
                        + 2 * _padded2d_bytes(D, d1) + _padded2d_bytes(1, d1)
                        + _padded2d_bytes(d1, d2) + 2 * _padded2d_bytes(1, d2))
    need = 2 * stream_row * TB + temp_row * TB + weight_bytes + (16 << 20)
    ceiling = (48 << 20) if vmem_cap <= (96 << 20) else min(
        100 << 20, int(0.78 * vmem_cap))
    vmem_limit = int(min(max(need, 32 << 20), ceiling))

    flops = int(2 * B_pad * (S_pad * D + D * D + 3 * D * d1 + 2 * d1 * d2 + 2 * d2))
    bytes_accessed = int(B_pad * s_chunks * k * D * itemsize
                         + 2 * B_pad * D * 4 + weight_bytes // 2 + B_pad * 4)

    resident = lambda shape: pl.BlockSpec(shape, lambda i: (0,) * len(shape))

    out = pl.pallas_call(
        partial(din_kernel, k=k),
        out_shape=jax.ShapeDtypeStruct((B_pad, 1), jnp.float32),
        grid=grid,
        in_specs=[
            pl.BlockSpec((TB, s_chunks, k * D), lambda i: (i, 0, 0)),  # history
            pl.BlockSpec((2, TB, D), lambda i: (0, i, 0)),             # pos/neg items
            resident((D, D)),          # w_user (BN folded)
            resident((1, D)),          # b_user (BN folded)
            resident((D, d1)),         # w1_u
            resident((D, d1)),         # w1_i
            resident((1, d1)),         # b1
            resident((d1, d2)),        # w2
            resident((1, d2)),         # b2
            resident((1, d2)),         # wo^T
        ],
        out_specs=pl.BlockSpec((TB, 1), lambda i: (i, 0)),
        compiler_params=pltpu.CompilerParams(
            dimension_semantics=("parallel",),
            vmem_limit_bytes=vmem_limit),
        cost_estimate=pl.CostEstimate(
            flops=flops, transcendentals=0, bytes_accessed=bytes_accessed),
    )(hist, items, fw["w_user"], fw["b_user"], fw["w1_u"], fw["w1_i"],
      fw["b1"], fw["w2"], fw["b2"], fw["wo_t"])
    return out[:B, 0]


def din_forward_ref(params, user, item, neg_item, history_item):
    """Pure-JAX reference mirroring the torch module (eval mode)."""
    del user
    S = history_item.shape[1]
    hist_emb = embed_items(params, history_item)
    mask = (history_item != 0).astype(jnp.float32)

    pooled = jnp.sum(hist_emb * mask[:, :, None], axis=1) / float(S)
    h = (pooled - params["bn_mean"]) / jnp.sqrt(params["bn_var"] + 1e-5)
    h = h * params["bn_gamma"] + params["bn_beta"]
    u = h @ params["w_user"] + params["b_user"]

    def score(ids):
        ie = embed_items(params, ids)
        din = jnp.concatenate([u, ie], axis=-1)
        y = jnp.maximum(din @ params["w1"] + params["b1"], 0.0)
        y = jnp.maximum(y @ params["w2"] + params["b2"], 0.0)
        return (y @ params["wo"] + params["bo"])[:, 0]

    return score(item) - score(neg_item)


# --------------------------------- main ---------------------------------------

if __name__ == "__main__":
    user_num, item_num, category_num = 50, 40, 10
    embedding_dims = 32                 # item/category sub-embeddings: 16 each
    deep_dims = (64, 32)                # small stand-ins for (200, 80)
    B, S = 12, 10                       # exercises S lane-packing pad + B pad

    key = jax.random.PRNGKey(0)
    kp, ku, ki, kn, kh = jax.random.split(key, 5)

    params = make_params(kp, user_num, item_num, category_num,
                         embedding_dims, deep_dims)

    user = jax.random.randint(ku, (B,), 1, user_num, dtype=jnp.int32)
    item = jax.random.randint(ki, (B,), 1, item_num, dtype=jnp.int32)
    neg_item = jax.random.randint(kn, (B,), 1, item_num, dtype=jnp.int32)
    # include zeros in the history so the padding mask is exercised
    history_item = jax.random.randint(kh, (B, S), 0, item_num, dtype=jnp.int32)

    ref = jax.block_until_ready(
        din_forward_ref(params, user, item, neg_item, history_item))

    # exact-semantics path (f32 history stream): tight tolerance
    out_f32 = jax.block_until_ready(
        jax.jit(partial(din_forward, hist_dtype=jnp.float32))(
            params, user, item, neg_item, history_item))
    np.testing.assert_allclose(np.asarray(out_f32), np.asarray(ref),
                               rtol=1e-4, atol=1e-5)

    # default fast path (bf16 history stream): tolerance loosened for the cast
    out_bf16 = jax.block_until_ready(
        jax.jit(din_forward)(params, user, item, neg_item, history_item))
    np.testing.assert_allclose(np.asarray(out_bf16), np.asarray(ref),
                               rtol=5e-2, atol=5e-3)

    print("KERNEL_OK")
</pallas_src>

<mosaic_0001>
module attributes {stable_mosaic.version = 11 : i64} {
  func.func @din_kernel(%arg0: i32, %arg1: memref<8x3x128xf32, #tpu.memory_space<vmem>>, %arg2: memref<2x8x32xf32, #tpu.memory_space<vmem>>, %arg3: memref<32x32xf32, #tpu.memory_space<vmem>>, %arg4: memref<1x32xf32, #tpu.memory_space<vmem>>, %arg5: memref<32x64xf32, #tpu.memory_space<vmem>>, %arg6: memref<32x64xf32, #tpu.memory_space<vmem>>, %arg7: memref<1x64xf32, #tpu.memory_space<vmem>>, %arg8: memref<64x32xf32, #tpu.memory_space<vmem>>, %arg9: memref<1x32xf32, #tpu.memory_space<vmem>>, %arg10: memref<1x32xf32, #tpu.memory_space<vmem>>, %arg11: memref<8x1xf32, #tpu.memory_space<vmem>>) attributes {dimension_semantics = [#tpu.dimension_semantics<parallel>], iteration_bounds = array<i64: 2>, scalar_prefetch = 0 : i64, scratch_operands = 0 : i64, tpu.core_type = #tpu.core_type<tc>, window_params = [{transform_indices = @transform_0, window_bounds = array<i64: 8, 3, 128>}, {transform_indices = @transform_1, window_bounds = array<i64: 2, 8, 32>}, {pipeline_mode = #tpu.pipeline_mode<synchronous>, transform_indices = @transform_2, window_bounds = array<i64: 32, 32>}, {pipeline_mode = #tpu.pipeline_mode<synchronous>, transform_indices = @transform_3, window_bounds = array<i64: 1, 32>}, {pipeline_mode = #tpu.pipeline_mode<synchronous>, transform_indices = @transform_4, window_bounds = array<i64: 32, 64>}, {pipeline_mode = #tpu.pipeline_mode<synchronous>, transform_indices = @transform_5, window_bounds = array<i64: 32, 64>}, {pipeline_mode = #tpu.pipeline_mode<synchronous>, transform_indices = @transform_6, window_bounds = array<i64: 1, 64>}, {pipeline_mode = #tpu.pipeline_mode<synchronous>, transform_indices = @transform_7, window_bounds = array<i64: 64, 32>}, {pipeline_mode = #tpu.pipeline_mode<synchronous>, transform_indices = @transform_8, window_bounds = array<i64: 1, 32>}, {pipeline_mode = #tpu.pipeline_mode<synchronous>, transform_indices = @transform_9, window_bounds = array<i64: 1, 32>}, {transform_indices = @transform_10, window_bounds = array<i64: 8, 1>}]} {
    %c0 = arith.constant 0 : index
    %c0_0 = arith.constant 0 : index
    %c0_1 = arith.constant 0 : index
    %0 = vector.load %arg1[%c0, %c0_0, %c0_1] : memref<8x3x128xf32, #tpu.memory_space<vmem>>, vector<8x3x128xf32>
    %cst = arith.constant dense<0.000000e+00> : vector<8x128xf32>
    %1 = vector.multi_reduction <add>, %0, %cst [1] : vector<8x3x128xf32> to vector<8x128xf32>
    %2 = vector.extract_strided_slice %1 {offsets = [0, 0], sizes = [8, 32], strides = [1, 1]} : vector<8x128xf32> to vector<8x32xf32>
    %3 = vector.extract_strided_slice %1 {offsets = [0, 32], sizes = [8, 32], strides = [1, 1]} : vector<8x128xf32> to vector<8x32xf32>
    %4 = arith.addf %2, %3 : vector<8x32xf32>
    %5 = vector.extract_strided_slice %1 {offsets = [0, 64], sizes = [8, 32], strides = [1, 1]} : vector<8x128xf32> to vector<8x32xf32>
    %6 = arith.addf %4, %5 : vector<8x32xf32>
    %7 = vector.extract_strided_slice %1 {offsets = [0, 96], sizes = [8, 32], strides = [1, 1]} : vector<8x128xf32> to vector<8x32xf32>
    %8 = arith.addf %6, %7 : vector<8x32xf32>
    %c0_2 = arith.constant 0 : index
    %c0_3 = arith.constant 0 : index
    %9 = vector.load %arg3[%c0_2, %c0_3] : memref<32x32xf32, #tpu.memory_space<vmem>>, vector<32x32xf32>
    %cst_4 = arith.constant dense<0.000000e+00> : vector<8x32xf32>
    %10 = tpu.matmul %8, %9, %cst_4 {dimension_numbers = #tpu.dot_dimension_numbers<[1], [0], [0], [1], [0, 0, 1, 1], [], []>} : vector<8x32xf32>, vector<32x32xf32>, vector<8x32xf32> -> vector<8x32xf32>
    %c0_5 = arith.constant 0 : index
    %c0_6 = arith.constant 0 : index
    %11 = vector.load %arg4[%c0_5, %c0_6] : memref<1x32xf32, #tpu.memory_space<vmem>>, vector<1x32xf32>
    %12 = vector.broadcast %11 : vector<1x32xf32> to vector<8x32xf32>
    %13 = arith.addf %10, %12 : vector<8x32xf32>
    %c0_7 = arith.constant 0 : index
    %c0_8 = arith.constant 0 : index
    %14 = vector.load %arg5[%c0_7, %c0_8] : memref<32x64xf32, #tpu.memory_space<vmem>>, vector<32x64xf32>
    %cst_9 = arith.constant dense<0.000000e+00> : vector<8x64xf32>
    %15 = tpu.matmul %13, %14, %cst_9 {dimension_numbers = #tpu.dot_dimension_numbers<[1], [0], [0], [1], [0, 0, 1, 1], [], []>} : vector<8x32xf32>, vector<32x64xf32>, vector<8x64xf32> -> vector<8x64xf32>
    %c0_10 = arith.constant 0 : index
    %c0_11 = arith.constant 0 : index
    %16 = vector.load %arg7[%c0_10, %c0_11] : memref<1x64xf32, #tpu.memory_space<vmem>>, vector<1x64xf32>
    %17 = vector.broadcast %16 : vector<1x64xf32> to vector<8x64xf32>
    %18 = arith.addf %15, %17 : vector<8x64xf32>
    %c0_12 = arith.constant 0 : index
    %c0_13 = arith.constant 0 : index
    %c0_14 = arith.constant 0 : index
    %19 = vector.load %arg2[%c0_12, %c0_13, %c0_14] : memref<2x8x32xf32, #tpu.memory_space<vmem>>, vector<1x8x32xf32>
    %20 = vector.shape_cast %19 : vector<1x8x32xf32> to vector<8x32xf32>
    %c0_15 = arith.constant 0 : index
    %c0_16 = arith.constant 0 : index
    %21 = vector.load %arg6[%c0_15, %c0_16] : memref<32x64xf32, #tpu.memory_space<vmem>>, vector<32x64xf32>
    %cst_17 = arith.constant dense<0.000000e+00> : vector<8x64xf32>
    %22 = tpu.matmul %20, %21, %cst_17 {dimension_numbers = #tpu.dot_dimension_numbers<[1], [0], [0], [1], [0, 0, 1, 1], [], []>} : vector<8x32xf32>, vector<32x64xf32>, vector<8x64xf32> -> vector<8x64xf32>
    %23 = arith.addf %18, %22 : vector<8x64xf32>
    %cst_18 = arith.constant 0.000000e+00 : f32
    %24 = vector.broadcast %cst_18 : f32 to vector<8x64xf32>
    %25 = arith.maximumf %23, %24 : vector<8x64xf32>
    %c0_19 = arith.constant 0 : index
    %c0_20 = arith.constant 0 : index
    %26 = vector.load %arg8[%c0_19, %c0_20] : memref<64x32xf32, #tpu.memory_space<vmem>>, vector<64x32xf32>
    %cst_21 = arith.constant dense<0.000000e+00> : vector<8x32xf32>
    %27 = tpu.matmul %25, %26, %cst_21 {dimension_numbers = #tpu.dot_dimension_numbers<[1], [0], [0], [1], [0, 0, 1, 1], [], []>} : vector<8x64xf32>, vector<64x32xf32>, vector<8x32xf32> -> vector<8x32xf32>
    %c0_22 = arith.constant 0 : index
    %c0_23 = arith.constant 0 : index
    %28 = vector.load %arg9[%c0_22, %c0_23] : memref<1x32xf32, #tpu.memory_space<vmem>>, vector<1x32xf32>
    %29 = vector.broadcast %28 : vector<1x32xf32> to vector<8x32xf32>
    %30 = arith.addf %27, %29 : vector<8x32xf32>
    %cst_24 = arith.constant 0.000000e+00 : f32
    %31 = vector.broadcast %cst_24 : f32 to vector<8x32xf32>
    %32 = arith.maximumf %30, %31 : vector<8x32xf32>
    %c1 = arith.constant 1 : index
    %c0_25 = arith.constant 0 : index
    %c0_26 = arith.constant 0 : index
    %33 = vector.load %arg2[%c1, %c0_25, %c0_26] : memref<2x8x32xf32, #tpu.memory_space<vmem>>, vector<1x8x32xf32>
    %34 = vector.shape_cast %33 : vector<1x8x32xf32> to vector<8x32xf32>
    %c0_27 = arith.constant 0 : index
    %c0_28 = arith.constant 0 : index
    %35 = vector.load %arg6[%c0_27, %c0_28] : memref<32x64xf32, #tpu.memory_space<vmem>>, vector<32x64xf32>
    %cst_29 = arith.constant dense<0.000000e+00> : vector<8x64xf32>
    %36 = tpu.matmul %34, %35, %cst_29 {dimension_numbers = #tpu.dot_dimension_numbers<[1], [0], [0], [1], [0, 0, 1, 1], [], []>} : vector<8x32xf32>, vector<32x64xf32>, vector<8x64xf32> -> vector<8x64xf32>
    %37 = arith.addf %18, %36 : vector<8x64xf32>
    %cst_30 = arith.constant 0.000000e+00 : f32
    %38 = vector.broadcast %cst_30 : f32 to vector<8x64xf32>
    %39 = arith.maximumf %37, %38 : vector<8x64xf32>
    %c0_31 = arith.constant 0 : index
    %c0_32 = arith.constant 0 : index
    %40 = vector.load %arg8[%c0_31, %c0_32] : memref<64x32xf32, #tpu.memory_space<vmem>>, vector<64x32xf32>
    %cst_33 = arith.constant dense<0.000000e+00> : vector<8x32xf32>
    %41 = tpu.matmul %39, %40, %cst_33 {dimension_numbers = #tpu.dot_dimension_numbers<[1], [0], [0], [1], [0, 0, 1, 1], [], []>} : vector<8x64xf32>, vector<64x32xf32>, vector<8x32xf32> -> vector<8x32xf32>
    %c0_34 = arith.constant 0 : index
    %c0_35 = arith.constant 0 : index
    %42 = vector.load %arg9[%c0_34, %c0_35] : memref<1x32xf32, #tpu.memory_space<vmem>>, vector<1x32xf32>
    %43 = vector.broadcast %42 : vector<1x32xf32> to vector<8x32xf32>
    %44 = arith.addf %41, %43 : vector<8x32xf32>
    %cst_36 = arith.constant 0.000000e+00 : f32
    %45 = vector.broadcast %cst_36 : f32 to vector<8x32xf32>
    %46 = arith.maximumf %44, %45 : vector<8x32xf32>
    %47 = arith.subf %32, %46 : vector<8x32xf32>
    %c0_37 = arith.constant 0 : index
    %c0_38 = arith.constant 0 : index
    %48 = vector.load %arg10[%c0_37, %c0_38] : memref<1x32xf32, #tpu.memory_space<vmem>>, vector<1x32xf32>
    %49 = vector.broadcast %48 : vector<1x32xf32> to vector<8x32xf32>
    %50 = arith.mulf %47, %49 : vector<8x32xf32>
    %cst_39 = arith.constant dense<0.000000e+00> : vector<8xf32>
    %51 = vector.multi_reduction <add>, %50, %cst_39 [1] : vector<8x32xf32> to vector<8xf32>
    %52 = vector.shape_cast %51 : vector<8xf32> to vector<8x1xf32>
    %c0_40 = arith.constant 0 : index
    %c0_41 = arith.constant 0 : index
    %53 = vector.load %arg11[%c0_40, %c0_41] : memref<8x1xf32, #tpu.memory_space<vmem>>, vector<8x1xf32>
    tpu.vector_store %arg11[%c0_40, %c0_41], %52 {strides = array<i32>} : memref<8x1xf32, #tpu.memory_space<vmem>>, vector<8x1xf32>,
    return
  }
  func.func @transform_0(%arg0: i32) -> (i32, i32, i32) {
    %c0_i32 = arith.constant 0 : i32
    %c0_i32_0 = arith.constant 0 : i32
    %c0_i32_1 = arith.constant 0 : i32
    return %arg0, %c0_i32, %c0_i32_0 : i32, i32, i32
  }
  func.func @transform_1(%arg0: i32) -> (i32, i32, i32) {
    %c0_i32 = arith.constant 0 : i32
    %c0_i32_0 = arith.constant 0 : i32
    %c0_i32_1 = arith.constant 0 : i32
    return %c0_i32, %arg0, %c0_i32_0 : i32, i32, i32
  }
  func.func @transform_2(%arg0: i32) -> (i32, i32) {
    %c0_i32 = arith.constant 0 : i32
    %c0_i32_0 = arith.constant 0 : i32
    %c0_i32_1 = arith.constant 0 : i32
    return %c0_i32, %c0_i32_0 : i32, i32
  }
  func.func @transform_3(%arg0: i32) -> (i32, i32) {
    %c0_i32 = arith.constant 0 : i32
    %c0_i32_0 = arith.constant 0 : i32
    %c0_i32_1 = arith.constant 0 : i32
    return %c0_i32, %c0_i32_0 : i32, i32
  }
  func.func @transform_4(%arg0: i32) -> (i32, i32) {
    %c0_i32 = arith.constant 0 : i32
    %c0_i32_0 = arith.constant 0 : i32
    %c0_i32_1 = arith.constant 0 : i32
    return %c0_i32, %c0_i32_0 : i32, i32
  }
  func.func @transform_5(%arg0: i32) -> (i32, i32) {
    %c0_i32 = arith.constant 0 : i32
    %c0_i32_0 = arith.constant 0 : i32
    %c0_i32_1 = arith.constant 0 : i32
    return %c0_i32, %c0_i32_0 : i32, i32
  }
  func.func @transform_6(%arg0: i32) -> (i32, i32) {
    %c0_i32 = arith.constant 0 : i32
    %c0_i32_0 = arith.constant 0 : i32
    %c0_i32_1 = arith.constant 0 : i32
    return %c0_i32, %c0_i32_0 : i32, i32
  }
  func.func @transform_7(%arg0: i32) -> (i32, i32) {
    %c0_i32 = arith.constant 0 : i32
    %c0_i32_0 = arith.constant 0 : i32
    %c0_i32_1 = arith.constant 0 : i32
    return %c0_i32, %c0_i32_0 : i32, i32
  }
  func.func @transform_8(%arg0: i32) -> (i32, i32) {
    %c0_i32 = arith.constant 0 : i32
    %c0_i32_0 = arith.constant 0 : i32
    %c0_i32_1 = arith.constant 0 : i32
    return %c0_i32, %c0_i32_0 : i32, i32
  }
  func.func @transform_9(%arg0: i32) -> (i32, i32) {
    %c0_i32 = arith.constant 0 : i32
    %c0_i32_0 = arith.constant 0 : i32
    %c0_i32_1 = arith.constant 0 : i32
    return %c0_i32, %c0_i32_0 : i32, i32
  }
  func.func @transform_10(%arg0: i32) -> (i32, i32) {
    %c0_i32 = arith.constant 0 : i32
    %c0_i32_0 = arith.constant 0 : i32
    return %arg0, %c0_i32 : i32, i32
  }
}

</mosaic_0001>

<bundles_post_ra>
// kernel: din_forward.1
= control target key start
LH: loop header
LB: loop body
LE: loop exit
PB: predicated region body
PF: predicated region fallthrough
CT: control target
= control target key end

     0   :  { %s1497_s13 = smov 0   ;;  %s1499_s14 = smov 0   ;;  %s1740_s0 = inlined_call_operand.vmem [shape: f32[16,3,128], index: 0, kind: input, shape index: {}]   ;;  %s1741_s1 = inlined_call_operand.vmem [shape: f32[2,16,32], index: 1, kind: input, shape index: {}]   ;;  %s1742_s2 = inlined_call_operand.vmem [shape: f32[32,32], index: 2, kind: input, shape index: {}]   ;;  %s1743_s3 = inlined_call_operand.vmem [shape: f32[1,32], index: 3, kind: input, shape index: {}]   ;;  %s1744_s4 = inlined_call_operand.vmem [shape: f32[32,64], index: 4, kind: input, shape index: {}]   ;;  %s1745_s5 = inlined_call_operand.vmem [shape: f32[32,64], index: 5, kind: input, shape index: {}]   ;;  %s1746_s6 = inlined_call_operand.vmem [shape: f32[1,64], index: 6, kind: input, shape index: {}]   ;;  %s1747_s7 = inlined_call_operand.vmem [shape: f32[64,32], index: 7, kind: input, shape index: {}]   ;;  %s1748_s8 = inlined_call_operand.vmem [shape: f32[1,32], index: 8, kind: input, shape index: {}]   ;;  %s1749_s9 = inlined_call_operand.vmem [shape: f32[1,32], index: 9, kind: input, shape index: {}]   ;;  %s1750_s10 = inlined_call_operand.vmem [shape: f32[16,1], index: 10, kind: output, shape index: {}]  }
   0x1   :  { %s1501_s15 = smov 0  }
   0x2 LB: > { %s1510_s16 = sadd.s32 4294967295, %s1434_s15   ;;  %s1512_s17 = sadd.s32 1, %s1434_s15   ;;  %s1434_s15 = sphi %s1501_s15, %s1753_s15   ;;  %s1430_s14 = sphi %s1499_s14, %s1752_s14   ;;  %s1426_s13 = sphi %s1497_s13, %s1751_s13  }
   0x3   : > { %s50_s18 = ssub.s32 %s1434_s15, %s1512_s17  ;;  %s53_s19 = sadd.s32 1, %s1430_s14 }
   0x4   : > { %p51_p0 = scmp.eq.s32.totalorder %s50_s18, 0  ;;  %p60_p1 = scmp.ne.s32.totalorder %s1430_s14, %s1426_s13 }
   0x5   : > { %p61_p2 = scmp.eq.s32.totalorder %s1434_s15, 0  ;;  %p1193_p4 = scmp.ge.s32.totalorder %s1434_s15, 2 }
   0x6   : > { %s1519_s20 = scalar_select %p51_p0, %s1430_s14, %s53_s19  }
   0x7   : > { %p62_p3 = por %p61_p2, %p60_p1  ;;  %304 = sbr.rel (%p1193_p4) target bundleno = 21 (0x15), region = 48 }
   0xe   : > { %316 = sbr.rel (!%p62_p3) target bundleno = 21 (0x15), region = 56  ;;  %s318_s21 = sand.u32 (%p62_p3), 1, %s1430_s14  }
   0xf   : > { %s1195_s22 = sshll.u32 (%p62_p3), %s1434_s15, 3  ;;  %s1194_s23 = sshll.u32 (%p62_p3), %s318_s21, 4 }
  0x10   : > { %s322_s26 = scalar_lea.vmem (%p62_p3), %s1741_s1, %s1195_s22  ;;  %s320_s27 = scalar_lea.vmem (%p62_p3), [#allocation2], %s1194_s23 }
  0x11   : > { %v352_v0 = vld [vmem:[%s322_s26] sm:$0xff] (%p62_p3)  ;;  %v354_v1 = vld [vmem:[%s322_s26 + $0x10] sm:$0xff] (%p62_p3) }
  0x12   : > { %353 = vst [vmem:[%s320_s27] sm:$0xff] (%p62_p3), %v352_v0  ;;  %355 = vst [vmem:[%s320_s27 + $0x8] sm:$0xff] (%p62_p3), %v354_v1 }
  0x15 PF: > { %p1196_p5 = scmp.ge.s32.totalorder %s1434_s15, 1  ;;  %p360_p6 = scmp.lt.s32.totalorder %s1434_s15, 3 }
  0x17   : > { %p361_p7 = pnand %p1196_p5, %p360_p6 }
  0x18   : > { %s1198_s28 = sshll.u32 (!%p361_p7), %s1510_s16, 3  ;;  %vm426_vm0 = vcmask (!%p361_p7), 1042432   ;;  %s1436_s15 = smov (!%p361_p7), 96   ;;  %vm1440_vm1 = vmmov (!%p361_p7), 0   ;;  %vm627_vm2 = vcmask (!%p361_p7), 261120   ;;  %vm607_vm3 = vcmask (!%p361_p7), 1041409  }
  0x19   : > { %364 = sbr.rel (%p361_p7) target bundleno = 1010 (0x3f2), region = 94  ;;  %p409_p8 = scmp.lt.s32.totalorder (!%p361_p7), %s1198_s28, 15  ;;  %vm610_vm4 = vcmask (!%p361_p7), 1042434   ;;  %vm613_vm5 = vcmask (!%p361_p7), 1043459   ;;  %vm616_vm6 = vcmask (!%p361_p7), 1044484   ;;  %vm619_vm7 = vcmask (!%p361_p7), 1045509  }
  0x1a   : > { %s1437_s18 = smov (!%p361_p7), 64   ;;  %s1438_s19 = smov (!%p361_p7), 32   ;;  %vm622_vm8 = vcmask (!%p361_p7), 1046534   ;;  %vm625_vm9 = vcmask (!%p361_p7), 1047559   ;;  %vm879_vm10 = vcmask (!%p361_p7), 523264   ;;  %vm1117_vm11 = vcmask (!%p361_p7), 7168  }
  0x1b   : > { %s367_s24 = sand.u32 (!%p361_p7), 1, %s1426_s13   ;;  %p414_p9 = scmp.lt.s32.totalorder (!%p361_p7), %s1510_s16, 1 }
  0x1c   : > { %s1197_s25 = sshll.u32 (!%p361_p7), %s367_s24, 4 }
  0x1d   : > { %s369_s26 = scalar_lea.vmem (!%p361_p7), [#allocation2], %s1197_s25 }
  0x20   : > { %s1755_s28 = smov (!%p409_p8, %s1198_s28), 15  ;;  %s1757_s16 = smov (!%p414_p9, %s1510_s16), 1 }
  0x21   : > { %s1199_s29 = sshll.u32 %s1755_s28, 2  ;;  %s1200_s13 = sshll.u32 %s1757_s16, 3 }
  0x22   : > { %s1529_s12 = scalar_lea.vmem %s1740_s0, %s1199_s29  ;;  %s417_s27 = scalar_lea.vmem %s1750_s10, %s1200_s13 }
  0x23   : > { %v419_v2 = vld [vmem:[%s1529_s12 + $0x4] sm:$0x7]  ;;  %v418_v3 = vld [vmem:[%s1529_s12] sm:$0x7]  ;;  %v420_v4 = vld [vmem:[%s1529_s12 + $0x8] sm:$0x7] }
  0x24   : > { %v434_v5 = vsel %vm426_vm0, %v419_v2, 0.0  ;;  %v427_v6 = vsel %vm426_vm0, %v418_v3, 0.0  ;;  %v441_v7 = vsel %vm426_vm0, %v420_v4, 0.0  ;;  %v421_v8 = vld [vmem:[%s1529_s12 + $0xc] sm:$0x7]  ;;  %v587_v2 = vld [vmem:[%s1742_s2] sm:$0xff] }
  0x25   : > { %v435_v9 = vrot.slane %v434_v5, 4  ;;  %v428_v10 = vrot.slane %v427_v6, 4  ;;  %v442_v11 = vrot.slane %v441_v7, 4  ;;  %v448_v12 = vsel %vm426_vm0, %v421_v8, 0.0  ;;  %v422_v13 = vld [vmem:[%s1529_s12 + $0x10] sm:$0x7] }
  0x26   : > { %v449_v14 = vrot.slane %v448_v12, 4  ;;  %v455_v15 = vsel %vm426_vm0, %v422_v13, 0.0  ;;  %v423_v16 = vld [vmem:[%s1529_s12 + $0x14] sm:$0x7]  ;;  %v424_v17 = vld [vmem:[%s1529_s12 + $0x18] sm:$0x7] }
  0x27   : > { %v436_v18 = vadd.f32 %v435_v9, %v434_v5  ;;  %v429_v19 = vadd.f32 %v428_v10, %v427_v6  ;;  %v443_v20 = vadd.f32 %v442_v11, %v441_v7  ;;  %v456_v21 = vrot.slane %v455_v15, 4  ;;  %v425_v46 = vld [vmem:[%s1529_s12 + $0x1c] sm:$0x7]  ;;  %v588_v3 = vld [vmem:[%s1742_s2 + $0x8] sm:$0xff]  ;;  %v589_v6 = vld [vmem:[%s1742_s2 + $0x10] sm:$0xff] }
  0x28   : > { %v450_v22 = vadd.f32 %v449_v14, %v448_v12  ;;  %v462_v23 = vsel %vm426_vm0, %v423_v16, 0.0  ;;  %v469_v24 = vsel %vm426_vm0, %v424_v17, 0.0  ;;  %v476_v52 = vsel %vm426_vm0, %v425_v46, 0.0  ;;  %v590_v7 = vld [vmem:[%s1742_s2 + $0x18] sm:$0xff]  ;;  %v785_v10 = vld [vmem:[%s1745_s5] sm:$0xff]  ;;  %v786_v11 = vld [vmem:[%s1745_s5 + $0x8] sm:$0xff] }
  0x29   : > { %v437_v25 = vrot.slane %v436_v18, 2  ;;  %v430_v26 = vrot.slane %v429_v19, 2  ;;  %v444_v27 = vrot.slane %v443_v20, 2  ;;  %v457_v28 = vadd.f32 %v456_v21, %v455_v15  ;;  %v787_v13 = vld [vmem:[%s1745_s5 + $0x10] sm:$0xff]  ;;  %v788_v14 = vld [vmem:[%s1745_s5 + $0x18] sm:$0xff] }
  0x2a   : > { %v451_v29 = vrot.slane %v450_v22, 2  ;;  %v463_v30 = vrot.slane %v462_v23, 4  ;;  %v470_v37 = vrot.slane %v469_v24, 4  ;;  %v477_v56 = vrot.slane %v476_v52, 4  ;;  %v784_v16 = vld [vmem:[%s369_s26] sm:$0xff]  ;;  %v1208_v17 = vld [vmem:[%s369_s26 + $0x8] sm:$0xff] }
  0x2b   : > { %v438_v31 = vadd.f32 %v437_v25, %v436_v18  ;;  %v431_v32 = vadd.f32 %v430_v26, %v429_v19  ;;  %v445_v33 = vadd.f32 %v444_v27, %v443_v20  ;;  %v458_v34 = vrot.slane %v457_v28, 2 }
  0x2c   : > { %v452_v35 = vadd.f32 %v451_v29, %v450_v22  ;;  %v464_v36 = vadd.f32 %v463_v30, %v462_v23  ;;  %v471_v47 = vadd.f32 %v470_v37, %v469_v24  ;;  %v478_v59 = vadd.f32 %v477_v56, %v476_v52 }
  0x2d   : > { %v439_v38 = vrot.slane %v438_v31, 1  ;;  %v432_v39 = vrot.slane %v431_v32, 1  ;;  %v446_v40 = vrot.slane %v445_v33, 1  ;;  %v459_v41 = vadd.f32 %v458_v34, %v457_v28 }
  0x2e   : > { %v453_v42 = vrot.slane %v452_v35, 1  ;;  %v465_v43 = vrot.slane %v464_v36, 2  ;;  %v472_v55 = vrot.slane %v471_v47, 2  ;;  %v479_v61 = vrot.slane %v478_v59, 2 }
  0x2f   : > { %v1545_v44 = vadd.f32 %v439_v38, %v438_v31  ;;  %v1547_v45 = vadd.f32 %v432_v39, %v431_v32  ;;  %v1554_v48 = vadd.f32 %v446_v40, %v445_v33  ;;  %v460_v50 = vrot.slane %v459_v41, 1 }
  0x30   : > { %v1556_v49 = vadd.f32 %v453_v42, %v452_v35  ;;  %v466_v51 = vadd.f32 %v465_v43, %v464_v36  ;;  %v473_v58 = vadd.f32 %v472_v55, %v471_v47  ;;  %v480_v63 = vadd.f32 %v479_v61, %v478_v59 }
  0x31   : > { %493 = vrot.lane.b32.xlu0 %v1545_v44, %s1436_s15  ;;  %491 = vrot.lane.b32.xlu1 %v1547_v45, %s1436_s15  ;;  %v1563_v53 = vadd.f32 %v460_v50, %v459_v41  ;;  %v1335_v4 = vpack.c.bf16 %v588_v3, %v587_v2  ;;  %v1439_v5 = vmov 0.0|0.0   ;;  %v1338_v8 = vpack.c.bf16 %v590_v7, %v589_v6 }
  0x32   : > { %v467_v54 = vrot.slane %v466_v51, 1  ;;  %v474_v60 = vrot.slane %v473_v58, 1  ;;  %v481_v0 = vrot.slane %v480_v63, 1  ;;  %1334 = vmatprep.subr.bf16.mxu1 %v1439_v5  ;;  %1346 = vmatprep.subr.bf16.mxu0 %v1439_v5  ;;  %v1441_v9 = vmov 0.0  }
  0x33   : > { %1336 = vmatpush3.bf16.msra.mxu1 %v1335_v4  ;;  %1260 = vmatprep.mubr.msk.f32.mxu1 %vm1440_vm1, %v1441_v9  ;;  %v1347_v12 = vpack.c.bf16 %v786_v11, %v785_v10  ;;  %v1350_v15 = vpack.c.bf16 %v788_v14, %v787_v13 }
  0x34   : > { %v1569_v57 = vadd.f32 %v467_v54, %v466_v51  ;;  %v1579_v62 = vadd.f32 %v474_v60, %v473_v58  ;;  %v1589_v1 = vadd.f32 %v481_v0, %v480_v63  ;;  %1337 = vmatprep.subr.bf16.mxu1 %v1439_v5  ;;  %1282 = vmatprep.mubr.msk.f32.mxu0 %vm1440_vm1, %v1441_v9 }
  0x35   : > { %495 = vrot.lane.b32.xlu0 %v1554_v48, %s1436_s15  ;;  %497 = vrot.lane.b32.xlu1 %v1556_v49, %s1436_s15 }
  0x36   : > { %1348 = vmatpush3.bf16.msra.mxu0 %v1347_v12 }
  0x37   : > { %1339 = vmatpush3.bf16.msra.mxu1 %v1338_v8  ;;  %1349 = vmatprep.subr.bf16.mxu0 %v1439_v5 }
  0x38   : > { %1340 = vmatprep.subr.bf16.mxu1 %v1439_v5 }
  0x39   : > { %525 = vrot.lane.b32.xlu0 %v1545_v44, %s1437_s18  ;;  %499 = vrot.lane.b32.xlu1 %v1563_v53, %s1436_s15 }
  0x3a   : > { %1351 = vmatpush3.bf16.msra.mxu0 %v1350_v15 }
  0x3b   : > { %1364 = vmatprep.subr.bf16.mxu0 %v1439_v5 }
  0x3d   : > { %527 = vrot.lane.b32.xlu0 %v1554_v48, %s1437_s18  ;;  %501 = vrot.lane.b32.xlu1 %v1569_v57, %s1436_s15 }
  0x3e   : > { %1283 = vmatmul.mubr.msk.f32.vlgmr.msra.gmra.mrb[0].mxu0 %vm627_vm2, %v784_v16 }
  0x3f   : > { %1366 = vmatpush3.bf16.msra.mxu0 %v1347_v12  ;;  %1312 = vmatprep.mubr.msk.f32.mxu0 %vm1440_vm1, %v1441_v9 }
  0x40   : > { %1367 = vmatprep.subr.bf16.mxu0 %v1439_v5 }
  0x41   : > { %523 = vrot.lane.b32.xlu0 %v1547_v45, %s1437_s18  ;;  %529 = vrot.lane.b32.xlu1 %v1556_v49, %s1437_s18 }
  0x43   : > { %1369 = vmatpush3.bf16.msra.mxu0 %v1350_v15 }
  0x44   : > { %1370 = vmatprep.subr.bf16.mxu0 %v1439_v5 }
  0x45   : > { %557 = vrot.lane.b32.xlu0 %v1545_v44, %s1438_s19  ;;  %503 = vrot.lane.b32.xlu1 %v1579_v62, %s1436_s15 }
  0x46   : > { %1313 = vmatmul.mubr.msk.f32.vlgmr.msra.gmra.mrb[2].mxu0 %vm627_vm2, %v1208_v17 }
  0x47   : > { %1331 = vmatprep.mubr.msk.f32.mxu0 %vm1440_vm1, %v1441_v9 }
  0x49   : > { %531 = vrot.lane.b32.xlu0 %v1563_v53, %s1437_s18  ;;  %559 = vrot.lane.b32.xlu1 %v1554_v48, %s1438_s19 }
  0x4d   : > { %505 = vrot.lane.b32.xlu0 %v1589_v1, %s1436_s15  ;;  %533 = vrot.lane.b32.xlu1 %v1569_v57, %s1437_s18 }
  0x51   : > { %555 = vrot.lane.b32.xlu0 %v1547_v45, %s1438_s19  ;;  %561 = vrot.lane.b32.xlu1 %v1556_v49, %s1438_s19 }
  0x55   : > { %535 = vrot.lane.b32.xlu0 %v1579_v62, %s1437_s18  ;;  %563 = vrot.lane.b32.xlu1 %v1563_v53, %s1438_s19 }
  0x59   : > { %537 = vrot.lane.b32.xlu0 %v1589_v1, %s1437_s18  ;;  %565 = vrot.lane.b32.xlu1 %v1569_v57, %s1438_s19 }
  0x5d   : > { %567 = vrot.lane.b32.xlu0 %v1579_v62, %s1438_s19  ;;  %569 = vrot.lane.b32.xlu1 %v1589_v1, %s1438_s19 }
  0xa3   : > { %v494_v18 = vpop.permute.xlu0 %493  ;;  %v492_v19 = vpop.permute.xlu1 %491 }
  0xa4   : > { %v516_v34 = vadd.f32 %v494_v18, %v1545_v44  ;;  %v515_v35 = vadd.f32 %v492_v19, %v1547_v45 }
  0xa7   : > { %v496_v20 = vpop.permute.xlu0 %495  ;;  %v498_v21 = vpop.permute.xlu1 %497 }
  0xa8   : > { %v517_v39 = vadd.f32 %v496_v20, %v1554_v48  ;;  %v518_v40 = vadd.f32 %v498_v21, %v1556_v49  ;;  %v702_v21 = vld [vmem:[%s1744_s4 + $0x10] sm:$0xff] }
  0xab   : > { %v526_v22 = vpop.permute.xlu0 %525  ;;  %v500_v23 = vpop.permute.xlu1 %499 }
  0xac   : > { %v548_v36 = vadd.f32 %v526_v22, %v516_v34  ;;  %v519_v43 = vadd.f32 %v500_v23, %v1563_v53  ;;  %v703_v22 = vld [vmem:[%s1744_s4 + $0x18] sm:$0xff] }
  0xad   : > { %v1344_v23 = vpack.c.bf16 %v703_v22, %v702_v21 }
  0xaf   : > { %v528_v24 = vpop.permute.xlu0 %527  ;;  %v502_v25 = vpop.permute.xlu1 %501 }
  0xb0   : > { %v549_v46 = vadd.f32 %v528_v24, %v517_v39  ;;  %v520_v44 = vadd.f32 %v502_v25, %v1569_v57  ;;  %v864_v24 = vld [vmem:[%s1747_s7] sm:$0xff]  ;;  %v865_v25 = vld [vmem:[%s1747_s7 + $0x8] sm:$0xff] }
  0xb3   : > { %v524_v26 = vpop.permute.xlu0 %523  ;;  %v530_v27 = vpop.permute.xlu1 %529 }
  0xb4   : > { %v547_v41 = vadd.f32 %v524_v26, %v515_v35  ;;  %v550_v47 = vadd.f32 %v530_v27, %v518_v40  ;;  %v1353_v26 = vpack.c.bf16 %v865_v25, %v864_v24  ;;  %v866_v27 = vld [vmem:[%s1747_s7 + $0x10] sm:$0xff]  ;;  %v871_v40 = vld [vmem:[%s1747_s7 + $0x38] sm:$0xff] }
  0xb6   : > { %1372 = vmatpush3.bf16.msra.mxu0 %v1353_v26 }
  0xb7   : > { %v558_v28 = vpop.permute.xlu0 %557  ;;  %v504_v29 = vpop.permute.xlu1 %503  ;;  %1373 = vmatprep.subr.bf16.mxu0 %v1439_v5 }
  0xb8   : > { %v580_v42 = vadd.f32 %v558_v28, %v548_v36  ;;  %v521_v53 = vadd.f32 %v504_v29, %v1579_v62  ;;  %v700_v62 = vld [vmem:[%s1744_s4] sm:$0xff]  ;;  %v867_v28 = vld [vmem:[%s1747_s7 + $0x18] sm:$0xff] }
  0xb9   : > { %v1356_v29 = vpack.c.bf16 %v867_v28, %v866_v27  ;;  %v868_v36 = vld [vmem:[%s1747_s7 + $0x20] sm:$0xff] }
  0xba   : > { %v606_v55 = vrot.slane %v580_v42, 7 }
  0xbb   : > { %v532_v30 = vpop.permute.xlu0 %531  ;;  %v560_v31 = vpop.permute.xlu1 %559  ;;  %1375 = vmatpush3.bf16.msra.mxu0 %v1356_v29 }
  0xbc   : > { %v551_v54 = vadd.f32 %v532_v30, %v519_v43  ;;  %v581_v45 = vadd.f32 %v560_v31, %v549_v46  ;;  %1376 = vmatprep.subr.bf16.mxu0 %v1439_v5  ;;  %v1203_v43 = vld [vmem:[%s1746_s6] ss:$0 sm:$0xff] }
  0xbe   : > { %v609_v61 = vrot.slane %v581_v45, 6 }
  0xbf   : > { %v506_v32 = vpop.permute.xlu0 %505  ;;  %v534_v33 = vpop.permute.xlu1 %533 }
  0xc0   : > { %v552_v58 = vadd.f32 %v534_v33, %v520_v44  ;;  %v522_v63 = vadd.f32 %v506_v32, %v1589_v1  ;;  %v701_v1 = vld [vmem:[%s1744_s4 + $0x8] sm:$0xff]  ;;  %v1201_v32 = vld [vmem:[%s1743_s3] ss:$0 sm:$0xff] }
  0xc1   : > { %v1341_v18 = vpack.c.bf16 %v701_v1, %v700_v62 }
  0xc3   : > { %v556_v37 = vpop.permute.xlu0 %555  ;;  %v562_v38 = vpop.permute.xlu1 %561 }
  0xc4   : > { %v579_v50 = vadd.f32 %v556_v37, %v547_v41  ;;  %v582_v56 = vadd.f32 %v562_v38, %v550_v47  ;;  %v869_v37 = vld [vmem:[%s1747_s7 + $0x28] sm:$0xff] }
  0xc5   : > { %v1359_v38 = vpack.c.bf16 %v869_v37, %v868_v36 }
  0xc6   : > { %v608_v49 = vsel %vm607_vm3, %v606_v55, %v579_v50  ;;  %v612_v2 = vrot.slane %v582_v56, 5 }
  0xc7   : > { %v536_v51 = vpop.permute.xlu0 %535  ;;  %v564_v52 = vpop.permute.xlu1 %563  ;;  %v611_v57 = vsel %vm610_vm4, %v609_v61, %v608_v49  ;;  %1378 = vmatpush3.bf16.msra.mxu0 %v1359_v38 }
  0xc8   : > { %v583_v48 = vadd.f32 %v564_v52, %v551_v54  ;;  %v553_v3 = vadd.f32 %v536_v51, %v521_v53  ;;  %v614_v13 = vsel %vm613_vm5, %v612_v2, %v611_v57  ;;  %1379 = vmatprep.subr.bf16.mxu0 %v1439_v5  ;;  %v1206_v54 = vld [vmem:[%s1748_s8] ss:$0 sm:$0xff] }
  0xc9   : > { %v1211_v53 = vld [vmem:[%s1749_s9] ss:$0 sm:$0xff] }
  0xca   : > { %v615_v4 = vrot.slane %v583_v48, 4 }
  0xcb   : > { %v538_v59 = vpop.permute.xlu0 %537  ;;  %v566_v60 = vpop.permute.xlu1 %565 }
  0xcc   : > { %v584_v0 = vadd.f32 %v566_v60, %v552_v58  ;;  %v554_v6 = vadd.f32 %v538_v59, %v522_v63  ;;  %v617_v14 = vsel %vm616_vm6, %v615_v4, %v614_v13 }
  0xce   : > { %v618_v7 = vrot.slane %v584_v0, 3 }
  0xcf   : > { %v568_v8 = vpop.permute.xlu0 %567  ;;  %v570_v10 = vpop.permute.xlu1 %569 }
  0xd0   : > { %v585_v11 = vadd.f32 %v568_v8, %v553_v3  ;;  %v586_v12 = vadd.f32 %v570_v10, %v554_v6  ;;  %v620_v17 = vsel %vm619_vm7, %v618_v7, %v617_v14 }
  0xd2   : > { %v621_v15 = vrot.slane %v585_v11, 2  ;;  %v624_v16 = vrot.slane %v586_v12, 1 }
  0xd4   : > { %v623_v19 = vsel %vm622_vm8, %v621_v15, %v620_v17 }
  0xd5   : > { %v626_v20 = vsel %vm625_vm9, %v624_v16, %v623_v19 }
  0xd6   : > { %1261 = vmatmul.mubr.msk.f32.vlgmr.msra.gmra.mrb[0].mxu1 %vm627_vm2, %v626_v20 }
  0xd7   : > { %1342 = vmatpush3.bf16.msra.mxu1 %v1341_v18  ;;  %1271 = vmatprep.mubr.msk.f32.mxu1 %vm1440_vm1, %v1441_v9 }
  0xd8   : > { %1343 = vmatprep.subr.bf16.mxu1 %v1439_v5 }
  0xdb   : > { %1345 = vmatpush3.bf16.msra.mxu1 %v1344_v23 }
  0xdc   : > { %1352 = vmatprep.subr.bf16.mxu1 %v1439_v5 }
 0x111   : > { %v858_v30 = vpop.f32.mrb[0].mxu0 }
 0x112   : > { %v1284_v31 = vpop.f32.mrb[1].mxu0 }
 0x119   : > { %v1025_v39 = vpop.f32.mrb[2].mxu0 }
 0x11a   : > { %v1314_v41 = vpop.f32.mrb[3].mxu0 }
 0x1a9   : > { %v696_v33 = vpop.f32.mrb[0].mxu1 }
 0x1aa   : > { %v697_v34 = vadd.f32 %v1201_v32, %v696_v33  ;;  %v1262_v35 = vpop.f32.mrb[1].mxu1 }
 0x1ac   : > { %1272 = vmatmul.mubr.msk.f32.vlgmr.msra.gmra.mrb[2].mxu1 %vm627_vm2, %v697_v34 }
 0x1ad   : > { %1354 = vmatpush3.bf16.msra.mxu1 %v1353_v26  ;;  %1301 = vmatprep.mubr.msk.f32.mxu1 %vm1440_vm1, %v1441_v9  ;;  %v870_v9 = vld [vmem:[%s1747_s7 + $0x30] sm:$0xff] }
 0x1ae   : > { %1355 = vmatprep.subr.bf16.mxu1 %v1439_v5  ;;  %v1362_v42 = vpack.c.bf16 %v871_v40, %v870_v9 }
 0x1b0   : > { %1381 = vmatpush3.bf16.msra.mxu0 %v1362_v42 }
 0x1b1   : > { %1357 = vmatpush3.bf16.msra.mxu1 %v1356_v29 }
 0x1b2   : > { %1358 = vmatprep.subr.bf16.mxu1 %v1439_v5 }
 0x1b5   : > { %1360 = vmatpush3.bf16.msra.mxu1 %v1359_v38 }
 0x1b6   : > { %1361 = vmatprep.subr.bf16.mxu1 %v1439_v5 }
 0x1b9   : > { %1363 = vmatpush3.bf16.msra.mxu1 %v1362_v42 }
 0x27f   : > { %v780_v46 = vpop.f32.mrb[2].mxu1 }
 0x280   : > { %v781_v47 = vadd.f32 %v1203_v43, %v780_v46  ;;  %v1273_v50 = vpop.f32.mrb[3].mxu1 }
 0x282   : > { %v862_v5 = vadd.f32 %v858_v30, %v781_v47  ;;  %v1029_v51 = vadd.f32 %v1025_v39, %v781_v47 }
 0x284   : > { %v863_v52 = vmax.f32 %v862_v5, 0.0  ;;  %v1030_v44 = vmax.f32 %v1029_v51, 0.0 }
 0x286   : > { %1302 = vmatmul.mubr.msk.f32.vlgmr.msra.gmra.mrb[4].mxu1 %vm879_vm10, %v863_v52  ;;  %1332 = vmatmul.mubr.msk.f32.vlgmr.msra.gmra.mrb[4].mxu0 %vm879_vm10, %v1030_v44 }
 0x359   : > { %v949_v45 = vpop.f32.mrb[4].mxu1  ;;  %v1100_v55 = vpop.f32.mrb[4].mxu0 }
 0x35a   : > { %v950_v56 = vadd.f32 %v1206_v54, %v949_v45  ;;  %v1101_v58 = vadd.f32 %v1206_v54, %v1100_v55  ;;  %v1303_v48 = vpop.f32.mrb[5].mxu1  ;;  %v1333_v49 = vpop.f32.mrb[5].mxu0 }
 0x35c   : > { %v953_v59 = vmax.f32 %v950_v56, 0.0  ;;  %v1104_v60 = vmax.f32 %v1101_v58, 0.0 }
 0x35e   : > { %v1105_v61 = vsub.f32 %v953_v59, %v1104_v60 }
 0x360   : > { %v1113_v63 = vmul.f32 %v1211_v53, %v1105_v61 }
 0x362   : > { %v1114_v0 = vsel %vm627_vm2, %v1113_v63, 0.0 }
 0x363   : > { %1115 = vadd.xlane.f32.xlu0 %v1114_v0 }
 0x3f0   : > { %v1116_v2 = vpop.xlane.xlu0 %1115 }
 0x3f1   : > { %1118 = vst.msk [vmem:[%s417_s27] sm:$0xff] %vm1117_vm11, %v1116_v2 }
 0x3f2 PF: > { %p17_p10 = scmp.ge.s32.totalorder %s1512_s17, 4   ;;  %s1751_s13 = smov %s1430_s14 }
 0x3f3   : > { %s1752_s14 = smov %s1519_s20  ;;  %s1753_s15 = smov %s1512_s17 }
 0x3f4   :  { %19 = sbr.rel (!%p17_p10) target bundleno = 2 (0x2), region = 137 }

</bundles_post_ra>
